<compile_context>
chip_gen: v5e
topology: v5e:2x2
jax: 0.10.0
libtpu: 0.0.40
codegen_flags: <defaults>
</compile_context>

<pallas_src>
import jax
import jax.numpy as jnp
from jax.experimental import pallas as pl
from jax.experimental.pallas import tpu as pltpu


def attention_head_kernel(x_ref, mask_ref, w_ref, bw_ref, v_ref, bv_ref,
                          out_ref, m_sc, l_sc):
    # x_ref:    [1, tL, F] features tile (stream dtype)   mask_ref: [1, tL, 1] f32
    # w_ref:    [F, H]  W.weight.T (MXU dtype, bf16)      bw_ref:   [1, H] f32
    # v_ref:    [1, H]  V.weight (f32)                    bv_ref:   [1, 1] f32
    # out_ref:  [1, 1, F] f32 pooled vector; block index ignores the sequence
    #           axis, so it stays VMEM-resident and doubles as the accumulator.
    # m_sc/l_sc: [1, 1] online-softmax running max / denominator.
    l_step = pl.program_id(1)

    @pl.when(l_step == 0)
    def _init():
        m_sc[...] = jnp.full_like(m_sc, -jnp.inf)
        l_sc[...] = jnp.zeros_like(l_sc)
        out_ref[...] = jnp.zeros_like(out_ref)

    x = x_ref[0]                               # [tL, F] stream dtype
    msk = mask_ref[0]                          # [tL, 1] f32
    xm = x.astype(w_ref.dtype)                 # bf16 operand for the MXU
    xf = x.astype(jnp.float32)                 # f32 for the weighted sum

    # att = tanh(x @ W.T + b_W) -> [tL, H]; bf16 MXU matmul, f32 accumulate.
    att = jnp.tanh(
        jnp.dot(xm, w_ref[...], preferred_element_type=jnp.float32) + bw_ref[...])
    # score = att @ V.T + b_V -> [tL, 1]; width-1 output, so VPU mul + lane
    # reduce is cheaper than a degenerate N=1 MXU matmul.
    s = jnp.sum(att * v_ref[...], axis=-1, keepdims=True) + bv_ref[...]
    # score[attention_mask == 0] = -10000.0.  For a {0,1} mask the additive
    # fold below is output-equivalent (exp of either -10000 or score-10000
    # underflows to 0 against any kept score) and avoids a lane-sparse select.
    s = s + (msk - 1.0) * 10000.0

    # ---- online softmax over the sequence axis (flash-attention style) ----
    m_cur = jnp.max(s, axis=0, keepdims=True)       # [1, 1]
    m_new = jnp.maximum(m_sc[...], m_cur)
    alpha = jnp.exp(m_sc[...] - m_new)              # rescale older partials
    p = jnp.exp(s - m_new)                          # [tL, 1]
    # Denominator includes masked rows (their exp underflows to 0), exactly
    # like torch.softmax over -10000-filled scores; a fully masked row gives a
    # zero numerator and hence a zero output, also matching torch.
    l_sc[...] = alpha * l_sc[...] + jnp.sum(p, axis=0, keepdims=True)
    num = jnp.sum((p * msk) * xf, axis=0, keepdims=True)          # [1, F]
    out_ref[...] = alpha[None] * out_ref[...] + num[None]
    m_sc[...] = m_new

    @pl.when(l_step == pl.num_programs(1) - 1)
    def _finalize():
        inv_l = pl.reciprocal(l_sc[...], approx=False)    # exact 1/denominator
        out_ref[...] = out_ref[...] * inv_l[None]


def _round_up(x, m):
    return ((x + m - 1) // m) * m


def _auto_seq_tile(L, F, H, feat_isz, w_isz, step, budget_bytes, cap=2048):
    """Largest sequence tile (multiple of `step`) whose per-grid-step VMEM
    working set stays under `budget_bytes` (sized for v7x's 64 MiB VMEM)."""
    h_pad = _round_up(H, 128)
    f_pad = max(F, 128)

    def per_step_bytes(tl):
        feat = 2 * tl * f_pad * feat_isz                    # features, double-buffered
        mask = 2 * _round_up(tl, 8) * 128 * 4               # [tL,1] f32 pads to (8,128)
        wts = 2 * (F * h_pad * w_isz + 2 * h_pad * 4 + 3 * 128 * 4)   # resident consts
        tmp = tl * h_pad * 4 + 4 * _round_up(tl, 8) * 128 * 4         # att + score temps
        out = 2 * f_pad * 4 + 2 * 2 * 128 * 4                         # out block + m/l
        return feat + mask + wts + tmp + out

    hi = max(step, min(cap, _round_up(L, step)))
    best = step
    tl = step
    while tl <= hi:
        if per_step_bytes(tl) <= budget_bytes:
            best = tl
        tl += step
    return best


def attention_head(features, attention_mask, w_weight, w_bias, v_weight, v_bias,
                   *, seq_tile=None, mxu_dtype=jnp.bfloat16,
                   vmem_budget_bytes=12 * 1024 * 1024,
                   vmem_limit_bytes=32 * 1024 * 1024):
    """AttentionHead forward.

    features:       [B, L, F] float32 or bfloat16 (bf16 halves HBM traffic)
    attention_mask: [B, L]    float (1 = keep, 0 = pad)
    w_weight: [H, F], w_bias: [H]     (nn.Linear(in_features, hidden_dim))
    v_weight: [1, H], v_bias: [1]     (nn.Linear(hidden_dim, 1))
    returns:        [B, F] in features.dtype
    """
    B, L, F = features.shape
    H = w_weight.shape[0]
    feat_dtype = features.dtype
    feat_isz = jnp.dtype(feat_dtype).itemsize
    w_isz = jnp.dtype(mxu_dtype).itemsize
    # Sublane packing granularity of the streamed features tile (8 rows for
    # f32, 16 for bf16, 32 for fp8).
    step = max(8, 32 // feat_isz)

    if seq_tile is None:
        seq_tile = _auto_seq_tile(L, F, H, feat_isz, w_isz, step, vmem_budget_bytes)
    tL = _round_up(min(max(int(seq_tile), step), _round_up(L, step)), step)

    n_l = -(-L // tL)               # ceil div
    L_pad = n_l * tL
    mask_f = attention_mask.astype(jnp.float32)
    if L_pad != L:
        # Pad the sequence to a tile multiple.  Padded rows get mask 0, so
        # their softmax term underflows to 0 and their numerator is masked:
        # numerically inert.
        features = jnp.pad(features, ((0, 0), (0, L_pad - L), (0, 0)))
        mask_f = jnp.pad(mask_f, ((0, 0), (0, L_pad - L)))
    mask3 = mask_f.reshape(B, L_pad, 1)

    wT = jnp.asarray(w_weight).astype(mxu_dtype).T.reshape(F, H)
    bw = jnp.asarray(w_bias, jnp.float32).reshape(1, H)
    vw = jnp.asarray(v_weight, jnp.float32).reshape(1, H)
    bv = jnp.asarray(v_bias, jnp.float32).reshape(1, 1)

    flops = 2 * B * L_pad * F * H + 6 * B * L_pad * H + 6 * B * L_pad * F
    transcendentals = B * L_pad * (H + 1)        # tanh per hidden elem + exp per score
    bytes_accessed = (B * L_pad * F * feat_isz + 4 * B * L_pad
                      + F * H * w_isz + 4 * (2 * H + 1) + 4 * B * F)

    out = pl.pallas_call(
        attention_head_kernel,
        out_shape=jax.ShapeDtypeStruct((B, 1, F), jnp.float32),
        grid_spec=pltpu.PrefetchScalarGridSpec(
            num_scalar_prefetch=0,
            grid=(B, n_l),
            in_specs=[
                pl.BlockSpec((1, tL, F), lambda b, l: (b, l, 0)),   # features
                pl.BlockSpec((1, tL, 1), lambda b, l: (b, l, 0)),   # mask
                pl.BlockSpec((F, H), lambda b, l: (0, 0)),          # W.weight.T
                pl.BlockSpec((1, H), lambda b, l: (0, 0)),          # W.bias
                pl.BlockSpec((1, H), lambda b, l: (0, 0)),          # V.weight
                pl.BlockSpec((1, 1), lambda b, l: (0, 0)),          # V.bias
            ],
            out_specs=pl.BlockSpec((1, 1, F), lambda b, l: (b, 0, 0)),
            scratch_shapes=[
                pltpu.VMEM((1, 1), jnp.float32),   # running max
                pltpu.VMEM((1, 1), jnp.float32),   # running denominator
            ],
        ),
        compiler_params=pltpu.CompilerParams(
            dimension_semantics=("parallel", "arbitrary"),
            vmem_limit_bytes=vmem_limit_bytes),
        cost_estimate=pl.CostEstimate(
            flops=flops, transcendentals=transcendentals,
            bytes_accessed=bytes_accessed),
    )(features, mask3, wT, bw, vw, bv)
    return out.reshape(B, F).astype(feat_dtype)


def attention_head_ref(features, attention_mask, w_weight, w_bias, v_weight, v_bias):
    """Pure-JAX reference mirroring the PyTorch forward exactly."""
    att = jnp.tanh(jnp.einsum("blf,hf->blh", features, w_weight) + w_bias)
    score = jnp.sum(att * v_weight.reshape(1, 1, -1), axis=-1, keepdims=True) + v_bias
    score = jnp.where(attention_mask[:, :, None] == 0, -10000.0, score)
    weights = jax.nn.softmax(score, axis=1)
    return jnp.sum(weights * attention_mask[:, :, None] * features, axis=1)


if __name__ == "__main__":
    B, L, F, H = 2, 24, 32, 16     # batch, seq, in_features, hidden_dim
    key = jax.random.PRNGKey(0)
    kx, kw, kbw, kv, kbv = jax.random.split(key, 5)

    # Round MXU operands to bf16-representable f32 so the bf16 matmul products
    # are exact in both the kernel and the XLA reference — lets the primary
    # check below use a tight tolerance.
    def _bf16_round(a):
        return a.astype(jnp.bfloat16).astype(jnp.float32)

    features = _bf16_round(jax.random.normal(kx, (B, L, F), dtype=jnp.float32))
    bound_w = 1.0 / (F ** 0.5)
    w_weight = _bf16_round(
        jax.random.uniform(kw, (H, F), jnp.float32, -bound_w, bound_w))
    w_bias = jax.random.uniform(kbw, (H,), jnp.float32, -bound_w, bound_w)
    bound_v = 1.0 / (H ** 0.5)
    v_weight = jax.random.uniform(kv, (1, H), jnp.float32, -bound_v, bound_v)
    v_bias = jax.random.uniform(kbv, (1,), jnp.float32, -bound_v, bound_v)

    # deterministic ragged mask: row 0 keeps 17 tokens, row 1 keeps all 24
    lengths = jnp.array([17, 24], dtype=jnp.int32)
    attention_mask = (jnp.arange(L)[None, :] < lengths[:, None]).astype(jnp.float32)

    ref = attention_head_ref(features, attention_mask, w_weight, w_bias,
                             v_weight, v_bias)

    # 1) f32 streaming, bf16 MXU operands, seq_tile=8 -> 3 online-softmax steps.
    out = attention_head(features, attention_mask, w_weight, w_bias,
                         v_weight, v_bias, seq_tile=8)
    out = jax.block_until_ready(out)
    assert out.shape == (B, F)
    err = jnp.max(jnp.abs(out - ref))
    assert jnp.allclose(out, ref, rtol=1e-4, atol=1e-4), f"f32 multi-tile mismatch: {err}"

    # 2) automatic VMEM-aware tile pick (single tile at this L).
    out_auto = attention_head(features, attention_mask, w_weight, w_bias,
                              v_weight, v_bias)
    out_auto = jax.block_until_ready(out_auto)
    err_auto = jnp.max(jnp.abs(out_auto - ref))
    assert jnp.allclose(out_auto, ref, rtol=1e-4, atol=1e-4), \
        f"auto-tile mismatch: {err_auto}"

    # 3) bf16 streaming (halved HBM traffic) with seq_tile=16 -> L padded 24->32,
    #    exercising the ragged-L padding path; tolerance covers bf16 output rounding.
    out_bf16 = attention_head(features.astype(jnp.bfloat16), attention_mask,
                              w_weight, w_bias, v_weight, v_bias, seq_tile=16)
    out_bf16 = jax.block_until_ready(out_bf16)
    err_bf16 = jnp.max(jnp.abs(out_bf16.astype(jnp.float32) - ref))
    assert err_bf16 < 2e-2, f"bf16 stream mismatch: {err_bf16}"

    print("KERNEL_OK")
</pallas_src>

<mosaic_0001>
module attributes {stable_mosaic.version = 11 : i64} {
  func.func @attention_head_kernel(%arg0: i32, %arg1: i32, %arg2: memref<1x8x32xf32, #tpu.memory_space<vmem>>, %arg3: memref<1x8x1xf32, #tpu.memory_space<vmem>>, %arg4: memref<32x16xbf16, #tpu.memory_space<vmem>>, %arg5: memref<1x16xf32, #tpu.memory_space<vmem>>, %arg6: memref<1x16xf32, #tpu.memory_space<vmem>>, %arg7: memref<1x1xf32, #tpu.memory_space<vmem>>, %arg8: memref<1x1x32xf32, #tpu.memory_space<vmem>>, %arg9: memref<1x1xf32, #tpu.memory_space<vmem>>, %arg10: memref<1x1xf32, #tpu.memory_space<vmem>>) attributes {dimension_semantics = [#tpu.dimension_semantics<parallel>, #tpu.dimension_semantics<arbitrary>], iteration_bounds = array<i64: 2, 3>, scalar_prefetch = 0 : i64, scratch_operands = 2 : i64, tpu.core_type = #tpu.core_type<tc>, window_params = [{transform_indices = @transform_0, window_bounds = array<i64: 1, 8, 32>}, {transform_indices = @transform_1, window_bounds = array<i64: 1, 8, 1>}, {pipeline_mode = #tpu.pipeline_mode<synchronous>, transform_indices = @transform_2, window_bounds = array<i64: 32, 16>}, {pipeline_mode = #tpu.pipeline_mode<synchronous>, transform_indices = @transform_3, window_bounds = array<i64: 1, 16>}, {pipeline_mode = #tpu.pipeline_mode<synchronous>, transform_indices = @transform_4, window_bounds = array<i64: 1, 16>}, {pipeline_mode = #tpu.pipeline_mode<synchronous>, transform_indices = @transform_5, window_bounds = array<i64: 1, 1>}, {transform_indices = @transform_6, window_bounds = array<i64: 1, 1, 32>}]} {
    %c0_i32 = arith.constant 0 : i32
    %0 = arith.cmpi eq, %arg1, %c0_i32 : i32
    %1 = arith.extui %0 : i1 to i32
    %c0_i32_0 = arith.constant 0 : i32
    %2 = arith.cmpi ne, %1, %c0_i32_0 : i32
    scf.if %2 {
      %cst_37 = arith.constant 0xFF800000 : f32
      %59 = vector.broadcast %cst_37 : f32 to vector<1x1xf32>
      %c0_38 = arith.constant 0 : index
      %c0_39 = arith.constant 0 : index
      %60 = vector.load %arg9[%c0_38, %c0_39] : memref<1x1xf32, #tpu.memory_space<vmem>>, vector<1x1xf32>
      tpu.vector_store %arg9[%c0_38, %c0_39], %59 {strides = array<i32>} : memref<1x1xf32, #tpu.memory_space<vmem>>, vector<1x1xf32>,
      %cst_40 = arith.constant 0.000000e+00 : f32
      %61 = vector.broadcast %cst_40 : f32 to vector<1x1xf32>
      %c0_41 = arith.constant 0 : index
      %c0_42 = arith.constant 0 : index
      %62 = vector.load %arg10[%c0_41, %c0_42] : memref<1x1xf32, #tpu.memory_space<vmem>>, vector<1x1xf32>
      tpu.vector_store %arg10[%c0_41, %c0_42], %61 {strides = array<i32>} : memref<1x1xf32, #tpu.memory_space<vmem>>, vector<1x1xf32>,
      %cst_43 = arith.constant 0.000000e+00 : f32
      %63 = vector.broadcast %cst_43 : f32 to vector<1x1x32xf32>
      %c0_44 = arith.constant 0 : index
      %c0_45 = arith.constant 0 : index
      %c0_46 = arith.constant 0 : index
      %64 = vector.load %arg8[%c0_44, %c0_45, %c0_46] : memref<1x1x32xf32, #tpu.memory_space<vmem>>, vector<1x1x32xf32>
      tpu.vector_store %arg8[%c0_44, %c0_45, %c0_46], %63 {strides = array<i32>} : memref<1x1x32xf32, #tpu.memory_space<vmem>>, vector<1x1x32xf32>,
    } else {
    }
    %c0 = arith.constant 0 : index
    %c0_1 = arith.constant 0 : index
    %c0_2 = arith.constant 0 : index
    %3 = vector.load %arg2[%c0, %c0_1, %c0_2] : memref<1x8x32xf32, #tpu.memory_space<vmem>>, vector<1x8x32xf32>
    %4 = vector.shape_cast %3 : vector<1x8x32xf32> to vector<8x32xf32>
    %c0_3 = arith.constant 0 : index
    %c0_4 = arith.constant 0 : index
    %c0_5 = arith.constant 0 : index
    %5 = vector.load %arg3[%c0_3, %c0_4, %c0_5] : memref<1x8x1xf32, #tpu.memory_space<vmem>>, vector<1x8x1xf32>
    %6 = vector.shape_cast %5 : vector<1x8x1xf32> to vector<8x1xf32>
    %7 = arith.truncf %4 : vector<8x32xf32> to vector<8x32xbf16>
    %c0_6 = arith.constant 0 : index
    %c0_7 = arith.constant 0 : index
    %8 = vector.load %arg4[%c0_6, %c0_7] : memref<32x16xbf16, #tpu.memory_space<vmem>>, vector<32x16xbf16>
    %cst = arith.constant dense<0.000000e+00> : vector<8x16xf32>
    %9 = tpu.matmul %7, %8, %cst {dimension_numbers = #tpu.dot_dimension_numbers<[1], [0], [0], [1], [0, 0, 1, 1], [], []>} : vector<8x32xbf16>, vector<32x16xbf16>, vector<8x16xf32> -> vector<8x16xf32>
    %c0_8 = arith.constant 0 : index
    %c0_9 = arith.constant 0 : index
    %10 = vector.load %arg5[%c0_8, %c0_9] : memref<1x16xf32, #tpu.memory_space<vmem>>, vector<1x16xf32>
    %11 = vector.broadcast %10 : vector<1x16xf32> to vector<8x16xf32>
    %12 = arith.addf %9, %11 : vector<8x16xf32>
    %13 = math.tanh %12 : vector<8x16xf32>
    %c0_10 = arith.constant 0 : index
    %c0_11 = arith.constant 0 : index
    %14 = vector.load %arg6[%c0_10, %c0_11] : memref<1x16xf32, #tpu.memory_space<vmem>>, vector<1x16xf32>
    %15 = vector.broadcast %14 : vector<1x16xf32> to vector<8x16xf32>
    %16 = arith.mulf %13, %15 : vector<8x16xf32>
    %cst_12 = arith.constant dense<0.000000e+00> : vector<8xf32>
    %17 = vector.multi_reduction <add>, %16, %cst_12 [1] : vector<8x16xf32> to vector<8xf32>
    %18 = vector.shape_cast %17 : vector<8xf32> to vector<8x1xf32>
    %c0_13 = arith.constant 0 : index
    %c0_14 = arith.constant 0 : index
    %19 = vector.load %arg7[%c0_13, %c0_14] : memref<1x1xf32, #tpu.memory_space<vmem>>, vector<1x1xf32>
    %20 = vector.broadcast %19 : vector<1x1xf32> to vector<8x1xf32>
    %21 = arith.addf %18, %20 : vector<8x1xf32>
    %cst_15 = arith.constant 1.000000e+00 : f32
    %22 = vector.broadcast %cst_15 : f32 to vector<8x1xf32>
    %23 = arith.subf %6, %22 : vector<8x1xf32>
    %cst_16 = arith.constant 1.000000e+04 : f32
    %24 = vector.broadcast %cst_16 : f32 to vector<8x1xf32>
    %25 = arith.mulf %23, %24 : vector<8x1xf32>
    %26 = arith.addf %21, %25 : vector<8x1xf32>
    %cst_17 = arith.constant dense<0xFF800000> : vector<1xf32>
    %27 = vector.multi_reduction <maximumf>, %26, %cst_17 [0] : vector<8x1xf32> to vector<1xf32>
    %28 = vector.shape_cast %27 : vector<1xf32> to vector<1x1xf32>
    %c0_18 = arith.constant 0 : index
    %c0_19 = arith.constant 0 : index
    %29 = vector.load %arg9[%c0_18, %c0_19] : memref<1x1xf32, #tpu.memory_space<vmem>>, vector<1x1xf32>
    %30 = arith.maximumf %29, %28 : vector<1x1xf32>
    %c0_20 = arith.constant 0 : index
    %c0_21 = arith.constant 0 : index
    %31 = vector.load %arg9[%c0_20, %c0_21] : memref<1x1xf32, #tpu.memory_space<vmem>>, vector<1x1xf32>
    %32 = arith.subf %31, %30 : vector<1x1xf32>
    %33 = math.exp %32 : vector<1x1xf32>
    %34 = vector.broadcast %30 : vector<1x1xf32> to vector<8x1xf32>
    %35 = arith.subf %26, %34 : vector<8x1xf32>
    %36 = math.exp %35 : vector<8x1xf32>
    %c0_22 = arith.constant 0 : index
    %c0_23 = arith.constant 0 : index
    %37 = vector.load %arg10[%c0_22, %c0_23] : memref<1x1xf32, #tpu.memory_space<vmem>>, vector<1x1xf32>
    %38 = arith.mulf %33, %37 : vector<1x1xf32>
    %cst_24 = arith.constant dense<0.000000e+00> : vector<1xf32>
    %39 = vector.multi_reduction <add>, %36, %cst_24 [0] : vector<8x1xf32> to vector<1xf32>
    %40 = vector.shape_cast %39 : vector<1xf32> to vector<1x1xf32>
    %41 = arith.addf %38, %40 : vector<1x1xf32>
    %c0_25 = arith.constant 0 : index
    %c0_26 = arith.constant 0 : index
    %42 = vector.load %arg10[%c0_25, %c0_26] : memref<1x1xf32, #tpu.memory_space<vmem>>, vector<1x1xf32>
    tpu.vector_store %arg10[%c0_25, %c0_26], %41 {strides = array<i32>} : memref<1x1xf32, #tpu.memory_space<vmem>>, vector<1x1xf32>,
    %43 = arith.mulf %36, %6 : vector<8x1xf32>
    %44 = vector.broadcast %43 : vector<8x1xf32> to vector<8x32xf32>
    %45 = arith.mulf %44, %4 : vector<8x32xf32>
    %cst_27 = arith.constant dense<0.000000e+00> : vector<32xf32>
    %46 = vector.multi_reduction <add>, %45, %cst_27 [0] : vector<8x32xf32> to vector<32xf32>
    %47 = vector.shape_cast %46 : vector<32xf32> to vector<1x32xf32>
    %48 = vector.shape_cast %33 : vector<1x1xf32> to vector<1x1x1xf32>
    %c0_28 = arith.constant 0 : index
    %c0_29 = arith.constant 0 : index
    %c0_30 = arith.constant 0 : index
    %49 = vector.load %arg8[%c0_28, %c0_29, %c0_30] : memref<1x1x32xf32, #tpu.memory_space<vmem>>, vector<1x1x32xf32>
    %50 = vector.broadcast %48 : vector<1x1x1xf32> to vector<1x1x32xf32>
    %51 = arith.mulf %50, %49 : vector<1x1x32xf32>
    %52 = vector.shape_cast %47 : vector<1x32xf32> to vector<1x1x32xf32>
    %53 = arith.addf %51, %52 : vector<1x1x32xf32>
    %c0_31 = arith.constant 0 : index
    %c0_32 = arith.constant 0 : index
    %c0_33 = arith.constant 0 : index
    %54 = vector.load %arg8[%c0_31, %c0_32, %c0_33] : memref<1x1x32xf32, #tpu.memory_space<vmem>>, vector<1x1x32xf32>
    tpu.vector_store %arg8[%c0_31, %c0_32, %c0_33], %53 {strides = array<i32>} : memref<1x1x32xf32, #tpu.memory_space<vmem>>, vector<1x1x32xf32>,
    %c0_34 = arith.constant 0 : index
    %c0_35 = arith.constant 0 : index
    %55 = vector.load %arg9[%c0_34, %c0_35] : memref<1x1xf32, #tpu.memory_space<vmem>>, vector<1x1xf32>
    tpu.vector_store %arg9[%c0_34, %c0_35], %30 {strides = array<i32>} : memref<1x1xf32, #tpu.memory_space<vmem>>, vector<1x1xf32>,
    %c2_i32 = arith.constant 2 : i32
    %56 = arith.cmpi eq, %arg1, %c2_i32 : i32
    %57 = arith.extui %56 : i1 to i32
    %c0_i32_36 = arith.constant 0 : i32
    %58 = arith.cmpi ne, %57, %c0_i32_36 : i32
    scf.if %58 {
      %c0_37 = arith.constant 0 : index
      %c0_38 = arith.constant 0 : index
      %59 = vector.load %arg10[%c0_37, %c0_38] : memref<1x1xf32, #tpu.memory_space<vmem>>, vector<1x1xf32>
      %60 = tpu.reciprocal %59 : vector<1x1xf32> -> vector<1x1xf32>
      %c0_39 = arith.constant 0 : index
      %c0_40 = arith.constant 0 : index
      %c0_41 = arith.constant 0 : index
      %61 = vector.load %arg8[%c0_39, %c0_40, %c0_41] : memref<1x1x32xf32, #tpu.memory_space<vmem>>, vector<1x1x32xf32>
      %62 = vector.shape_cast %60 : vector<1x1xf32> to vector<1x1x1xf32>
      %63 = vector.broadcast %62 : vector<1x1x1xf32> to vector<1x1x32xf32>
      %64 = arith.mulf %61, %63 : vector<1x1x32xf32>
      %c0_42 = arith.constant 0 : index
      %c0_43 = arith.constant 0 : index
      %c0_44 = arith.constant 0 : index
      %65 = vector.load %arg8[%c0_42, %c0_43, %c0_44] : memref<1x1x32xf32, #tpu.memory_space<vmem>>, vector<1x1x32xf32>
      tpu.vector_store %arg8[%c0_42, %c0_43, %c0_44], %64 {strides = array<i32>} : memref<1x1x32xf32, #tpu.memory_space<vmem>>, vector<1x1x32xf32>,
    } else {
    }
    return
  }
  func.func @transform_0(%arg0: i32, %arg1: i32) -> (i32, i32, i32) {
    %c0_i32 = arith.constant 0 : i32
    %c0_i32_0 = arith.constant 0 : i32
    return %arg0, %arg1, %c0_i32 : i32, i32, i32
  }
  func.func @transform_1(%arg0: i32, %arg1: i32) -> (i32, i32, i32) {
    %c0_i32 = arith.constant 0 : i32
    %c0_i32_0 = arith.constant 0 : i32
    return %arg0, %arg1, %c0_i32 : i32, i32, i32
  }
  func.func @transform_2(%arg0: i32, %arg1: i32) -> (i32, i32) {
    %c0_i32 = arith.constant 0 : i32
    %c0_i32_0 = arith.constant 0 : i32
    %c0_i32_1 = arith.constant 0 : i32
    return %c0_i32, %c0_i32_0 : i32, i32
  }
  func.func @transform_3(%arg0: i32, %arg1: i32) -> (i32, i32) {
    %c0_i32 = arith.constant 0 : i32
    %c0_i32_0 = arith.constant 0 : i32
    %c0_i32_1 = arith.constant 0 : i32
    return %c0_i32, %c0_i32_0 : i32, i32
  }
  func.func @transform_4(%arg0: i32, %arg1: i32) -> (i32, i32) {
    %c0_i32 = arith.constant 0 : i32
    %c0_i32_0 = arith.constant 0 : i32
    %c0_i32_1 = arith.constant 0 : i32
    return %c0_i32, %c0_i32_0 : i32, i32
  }
  func.func @transform_5(%arg0: i32, %arg1: i32) -> (i32, i32) {
    %c0_i32 = arith.constant 0 : i32
    %c0_i32_0 = arith.constant 0 : i32
    %c0_i32_1 = arith.constant 0 : i32
    return %c0_i32, %c0_i32_0 : i32, i32
  }
  func.func @transform_6(%arg0: i32, %arg1: i32) -> (i32, i32, i32) {
    %c0_i32 = arith.constant 0 : i32
    %c0_i32_0 = arith.constant 0 : i32
    %c0_i32_1 = arith.constant 0 : i32
    return %arg0, %c0_i32, %c0_i32_0 : i32, i32, i32
  }
}

</mosaic_0001>

<bundles_post_ra>
// kernel: tpu_custom_call.1
= control target key start
LH: loop header
LB: loop body
LE: loop exit
PB: predicated region body
PF: predicated region fallthrough
CT: control target
= control target key end

     0   :  { %s971_s0 = inlined_call_operand.vmem [shape: f32[2,24,32], index: 0, kind: input, shape index: {}]   ;;  %s972_s1 = inlined_call_operand.vmem [shape: f32[2,24,1], index: 1, kind: input, shape index: {}]   ;;  %s973_s2 = inlined_call_operand.vmem [shape: bf16[32,16], index: 2, kind: input, shape index: {}]   ;;  %s974_s3 = inlined_call_operand.vmem [shape: f32[1,16], index: 3, kind: input, shape index: {}]   ;;  %s975_s4 = inlined_call_operand.vmem [shape: f32[1,16], index: 4, kind: input, shape index: {}]   ;;  %s976_s5 = inlined_call_operand.<no memory space> [shape: f32[1,1], index: 5, kind: input, shape index: {}]   ;;  %s977_s6 = inlined_call_operand.hbm [shape: f32[2,1,32], index: 6, kind: output, shape index: {}]  }
   0x1   :  { %v11_v0 = vstv %s976_s5 }
   0x2   :  { %12 = vst [vmem:[#allocation4] sm:$0x1] %v11_v0 }
   0x3   :  { %13 = vsyncpa [#allocation6], 0 }
   0x4   :  { %15 = vsyncpa [#allocation6 + $0x1], 0  ;;  %s812_s23 = smov 0   ;;  %s814_s24 = smov 0  }
   0x5   :  { %s816_s25 = smov 0   ;;  %s818_s26 = smov 0  }
   0x6   :  { %s820_s27 = smov 0   ;;  %s822_s28 = smov 0  }
   0x7   :  { %s824_s29 = smov 0   ;;  %s826_s30 = smov 0  }
   0x8 LB: > { %s561_s5 = sadd.s32 4294967295, %s768_s30   ;;  %s562_s7 = sadd.s32 4294967294, %s768_s30   ;;  %s768_s30 = sphi %s826_s30, %s21_s30   ;;  %s764_s29 = sphi %s824_s29, %s989_s29   ;;  %s760_s28 = sphi %s822_s28, %s988_s28   ;;  %s756_s27 = sphi %s820_s27, %s987_s27   ;;  %s752_s26 = sphi %s818_s26, %s986_s26   ;;  %s748_s25 = sphi %s816_s25, %s985_s25   ;;  %s744_s24 = sphi %s814_s24, %s984_s24   ;;  %s740_s23 = sphi %s812_s23, %s983_s23  }
   0x9   : > { %s30_s8 = sadd.s32 1, %s760_s28  ;;  %s33_s9 = sadd.s32 1, %s764_s29 }
   0xa   : > { %p31_p0 = scmp.ge.s32.totalorder %s30_s8, 3  ;;  %p190_p1 = scmp.ne.s32.totalorder %s748_s25, %s744_s24 }
   0xb   : > { %p191_p2 = scmp.eq.s32.totalorder %s561_s5, 5  ;;  %p196_p4 = scmp.ne.s32.totalorder %s744_s24, %s740_s23 }
   0xc   : > { %s991_s8 = smov (%p31_p0, %s30_s8), 0  ;;  %s993_s9 = smov (!%p31_p0, %s33_s9), %s764_s29 }
   0xd   : > { %p861_p3 = por %p191_p2, %p190_p1  ;;  %p35_p5 = scmp.ge.s32.totalorder %s993_s9, 2 }
   0xe   : > { %p197_p6 = scmp.eq.s32.totalorder %s562_s7, 5  ;;  %p565_p7 = scmp.ge.s32.totalorder %s768_s30, 1 }
   0xf   : > { %p249_p8 = scmp.lt.s32.totalorder %s768_s30, 7  ;;  %s995_s9 = smov (%p35_p5, %s993_s9), 0 }
  0x10   : > { %980 = sst [smem:[#allocation8_spill]] %s995_s9  ;;  %p871_p9 = por %p197_p6, %p196_p4 }
  0x11   : > { %p250_p10 = pnand %p565_p7, %p249_p8  ;;  %s177_s12 = ssub.s32 %s764_s29, %s995_s9 }
  0x12   : > { %s180_s13 = sadd.s32 1, %s748_s25  ;;  %p178_p11 = scmp.eq.s32.totalorder %s177_s12, 0 }
  0x13   : > { %253 = sbr.rel (%p250_p10) target bundleno = 617 (0x269), region = 44  ;;  %s287_s15 = sand.u32 (!%p250_p10), 1, %s744_s24  }
  0x14   : > { %s879_s14 = scalar_select %p178_p11, %s748_s25, %s180_s13  }
  0x15   : > { %p289_p12 = scmp.lt.s32.totalorder (!%p250_p10), %s756_s27, 1  ;;  %p291_p13 = scmp.lt.s32.totalorder (!%p250_p10), %s752_s26, 2 }
  0x16   : > { %s896_s9 = scalar_lea.vmem (!%p250_p10), [#allocation5], %s287_s15  ;;  %p568_p0 = scmp.ne.s32.totalorder (!%p250_p10), %s752_s26, 0 }
  0x18   : > { %s290_s16 = scalar_select %p289_p12, %s756_s27, 1 }
  0x19   : > { %s292_s17 = scalar_select %p291_p13, %s752_s26, 2 }
  0x1a   : > { %s584_s18 = smul.u32 3, %s290_s16 }
  0x1b   : > { %309 = sbr.rel (%p568_p0) target bundleno = 36 (0x24), region = 48 }
  0x1c   : > { %s294_s19 = sadd.s32 %s584_s18, %s292_s17 }
  0x1d   : > { %s566_s20 = sshll.u32 %s294_s19, 3 }
  0x1e   : > { %s296_s5 = scalar_lea.vmem %s971_s0, %s566_s20  ;;  %s892_s13 = scalar_lea.vmem %s972_s1, %s566_s20 }
  0x20   : > { %vm310_vm0 = vcmask 0   ;;  %vm313_vm1 = vcmask 253952   ;;  %v770_v1 = vmov -inf   ;;  %v771_v2 = vmov 0.0  }
  0x21   : > { %311 = vst.msk [vmem:[#allocation2] sm:$0x1] %vm310_vm0, %v770_v1 }
  0x22   : > { %312 = vst.msk [vmem:[#allocation3] sm:$0x1] %vm310_vm0, %v771_v2 }
  0x23   : > { %314 = vst.msk [vmem:[%s896_s9] sm:$0x1] %vm313_vm1, %v771_v2 }
  0x24 PF: > { %v583_v3 = vld [vmem:[%s973_s2 + $0x8] sm:$0xff]  ;;  %v582_v4 = vld [vmem:[%s973_s2] sm:$0xff]  ;;  %vm338_vm2 = vcmask 261120   ;;  %vm361_vm3 = vcmask 130048   ;;  %v772_v18 = vmov 0   ;;  %vm373_vm4 = vcmask 7168  }
  0x25   : > { %348 = vmatpush.bf16.msra.mxu0 %v583_v3  ;;  %v315_v5 = vld [vmem:[%s296_s5] sm:$0xff]  ;;  %661 = vset.pattern.permute.xlu1 %v772_v18  ;;  %vm402_vm5 = vcmask 0   ;;  %vm427_vm6 = vcmask 253952   ;;  %p579_p1 = scmp.ne.s32.totalorder %s752_s26, 2 }
  0x26   : > { %v317_v6 = vpack.c.bf16 %v315_v5, %v315_v5  ;;  %v662_v7 = vld [vmem:[%s974_s3] ss:$0 sm:$0xff]  ;;  %v664_v17 = vld [vmem:[#allocation4] ss:$0 sm:$0xff]  ;;  %660 = vset.pattern.permute.xlu0 %v772_v18 }
  0x27   : > { %v663_v10 = vld [vmem:[%s975_s4] ss:$0 sm:$0xff] }
  0x28   : > { %v316_v15 = vld [vmem:[%s892_s13] sm:$0xff] }
  0x29   : > { %349 = vmatpush.bf16.msra.mxu0 %v582_v4  ;;  %v578_v16 = vadd.f32 -1.0, %v316_v15  ;;  %v381_v29 = vld [vmem:[#allocation2] sm:$0x1]  ;;  %v392_v45 = vld [vmem:[#allocation3] sm:$0x1] }
  0x2a   : > { %v418_v59 = vld [vmem:[%s896_s9] sm:$0x1] }
  0x2b   : > { %v371_v19 = vmul.f32 10000.0, %v578_v16 }
  0x2c   : > { %577 = vmatmul.msk.bf16.vlgmr.msra.gmra.mxu0 %vm338_vm2, %v317_v6 }
  0xa9   : > { %v351_v8 = vpop.f32.mrf.mxu0 }
  0xaa   : > { %v352_v9 = vadd.f32 %v662_v7, %v351_v8 }
  0xac   : > { %665 = vtanh.f32 %v352_v9 }
  0xb1   : > { %v353_v11 = vpop.f32.mrf.mxu0 }
  0xb2   : > { %v666_v12 = vpop.eup %665 }
  0xb3   : > { %v360_v13 = vmul.f32 %v666_v12, %v663_v10 }
  0xb5   : > { %v362_v14 = vsel %vm361_vm3, %v360_v13, 0.0 }
  0xb6   : > { %363 = vadd.xlane.f32.xlu0 %v362_v14 }
 0x129   : > { %v364_v20 = vpop.xlane.xlu0 %363 }
 0x12a   : > { %v369_v21 = vadd.f32 %v664_v17, %v364_v20 }
 0x12c   : > { %v372_v22 = vadd.f32 %v371_v19, %v369_v21 }
 0x12e   : > { %v374_v23 = vsel %vm373_vm4, %v372_v22, -inf }
 0x12f   : > { %v375_v24 = vrot.slane %v374_v23, 4 }
 0x131   : > { %v376_v25 = vmax.f32 %v374_v23, %v375_v24 }
 0x133   : > { %v377_v26 = vrot.slane %v376_v25, 2 }
 0x135   : > { %v378_v27 = vmax.f32 %v376_v25, %v377_v26 }
 0x137   : > { %v379_v28 = vrot.slane %v378_v27, 1 }
 0x139   : > { %v380_v30 = vmax.f32 %v378_v27, %v379_v28 }
 0x13b   : > { %v382_v31 = vmax.f32 %v381_v29, %v380_v30 }
 0x13d   : > { %v387_v32 = vperm.slane %v382_v31, 0  ;;  %429 = vst.msk [vmem:[#allocation2] sm:$0x1] %vm402_vm5, %v382_v31  ;;  %v383_v33 = vsub.f32 %v381_v29, %v382_v31 }
 0x13f   : > { %v389_v34 = vsub.f32 %v372_v22, %v387_v32  ;;  %v384_v35 = vmul.f32 1.442695, %v383_v33 }
 0x141   : > { %v390_v36 = vmul.f32 1.442695, %v389_v34  ;;  %667 = vpow2.f32 %v384_v35 }
 0x143   : > { %669 = vpow2.f32 %v390_v36 }
 0x147   : > { %v668_v37 = vpop.eup %667 }
 0x148   : > { %421 = vperm.xlu1 %661, %v668_v37   ;;  %v393_v48 = vmul.f32 %v668_v37, %v392_v45 }
 0x149   : > { %v670_v38 = vpop.eup %669 }
 0x14a   : > { %v394_v39 = vsel %vm373_vm4, %v670_v38, 0.0  ;;  %v404_v40 = vmul.f32 %v670_v38, %v316_v15 }
 0x14b   : > { %v395_v41 = vrot.slane %v394_v39, 4 }
 0x14c   : > { %407 = vperm.xlu0 %660, %v404_v40  }
 0x14d   : > { %v396_v42 = vadd.f32 %v395_v41, %v394_v39 }
 0x14f   : > { %v397_v43 = vrot.slane %v396_v42, 2 }
 0x151   : > { %v398_v44 = vadd.f32 %v397_v43, %v396_v42 }
 0x153   : > { %v399_v46 = vrot.slane %v398_v44, 1 }
 0x155   : > { %v400_v47 = vadd.f32 %v399_v46, %v398_v44 }
 0x157   : > { %v401_v49 = vadd.f32 %v400_v47, %v393_v48 }
 0x159   : > { %403 = vst.msk [vmem:[#allocation3] sm:$0x1] %vm402_vm5, %v401_v49 }
 0x1ba   : > { %v422_v55 = vpop.permute.xlu1 %421 }
 0x1bb   : > { %v424_v57 = vperm.slane %v422_v55, 0 }
 0x1bd   : > { %v425_v61 = vmul.f32 %v424_v57, %v418_v59 }
 0x1be   : > { %v408_v50 = vpop.permute.xlu0 %407 }
 0x1bf   : > { %v410_v51 = vmul.f32 %v408_v50, %v315_v5 }
 0x1c1   : > { %v411_v52 = vsel %vm338_vm2, %v410_v51, 0.0 }
 0x1c2   : > { %v412_v53 = vrot.slane %v411_v52, 4 }
 0x1c4   : > { %v413_v54 = vadd.f32 %v412_v53, %v411_v52 }
 0x1c6   : > { %v414_v56 = vrot.slane %v413_v54, 2 }
 0x1c8   : > { %v415_v58 = vadd.f32 %v414_v56, %v413_v54 }
 0x1ca   : > { %v416_v60 = vrot.slane %v415_v58, 1 }
 0x1cc   : > { %v417_v62 = vadd.f32 %v416_v60, %v415_v58  ;;  %433 = sbr.rel (%p579_p1) target bundleno = 603 (0x25b), region = 52 }
 0x1ce   : > { %v426_v63 = vadd.f32 %v425_v61, %v417_v62 }
 0x1d0   : > { %428 = vst.msk [vmem:[%s896_s9] sm:$0x1] %vm427_vm6, %v426_v63 }
 0x1d1   : > { %v434_v0 = vld [vmem:[#allocation3] sm:$0x1]  ;;  %v773_v1 = vmov 0  }
 0x1d2   : > { %671 = vset.pattern.permute.xlu0 %v773_v1  ;;  %672 = vrcp.f32 %v434_v0  ;;  %v446_v4 = vand.u32 2147483648, %v434_v0  ;;  %vm440_vm7 = vweird.f32 %v434_v0  ;;  %v444_v6 = vand.u32 2147483647, %v434_v0 }
 0x1d4   : > { %v447_v8 = vor.u32 1.1754944e-38, %v446_v4  ;;  %vm445_vm10 = vcmp.eq.f32.partialorder %v444_v6, 8.507059e+37 }
 0x1d7   : > { %v449_v12 = vld [vmem:[%s896_s9] sm:$0x1] }
 0x1d8   : > { %v673_v2 = vpop.eup %672 }
 0x1d9   : > { %v436_v3 = vmul.f32 %v673_v2, %v434_v0  ;;  %vm441_vm8 = vweird.f32 %v673_v2 }
 0x1da   : > { %vm442_vm9 = vmor %vm440_vm7, %vm441_vm8 }
 0x1db   : > { %v437_v5 = vsub.f32 1.0, %v436_v3 }
 0x1dd   : > { %v438_v7 = vmul.f32 %v673_v2, %v437_v5 }
 0x1df   : > { %v439_v9 = vadd.f32 %v673_v2, %v438_v7 }
 0x1e1   : > { %v443_v10 = vsel %vm442_vm9, %v673_v2, %v439_v9 }
 0x1e2   : > { %v448_v11 = vsel %vm445_vm10, %v447_v8, %v443_v10 }
 0x1e3   : > { %452 = vperm.xlu0 %671, %v448_v11  }
 0x255   : > { %v453_v13 = vpop.permute.xlu0 %452 }
 0x256   : > { %v455_v14 = vperm.slane %v453_v13, 0 }
 0x258   : > { %v456_v15 = vmul.f32 %v455_v14, %v449_v12 }
 0x25a   : > { %457 = vst.msk [vmem:[%s896_s9] sm:$0x1] %vm427_vm6, %v456_v15 }
 0x25b PF: > { %s467_s12 = scalar_lea.hbm %s977_s6, %s756_s27  ;;  %s469_s13 = sshll.u32 %s896_s9, 4  ;;  %s470_s13 = int_to_ptr.vmem [resolvable:$true] %s469_s13 }
 0x25c   : > { %s471_s16 = sshll.u32 %s467_s12, 4  ;;  %s459_s17 = scalar_lea.sflag [#allocation6], %s287_s15  ;;  %s472_s16 = int_to_ptr.hbm [resolvable:$true] %s471_s16 }
 0x25d   : > { %s688_s18 = sshra.s32 %s472_s16, 4  ;;  %s694_s22 = scalar_lea.hbm %s977_s6, 2  ;;  %s689_s18 = int_to_ptr.hbm [resolvable:$true] %s688_s18 }
 0x25e   : > { %s690_s19 = scalar_lea.hbm %s689_s18, 1  ;;  %p695_p6 = scmp.lt.s32.totalorder %s689_s18, %s977_s6 }
 0x25f   : > { %p691_p2 = scmp.ne.s32.totalorder %s689_s18, %s690_s19  ;;  %p696_p7 = scmp.lt.s32.totalorder %s694_s22, %s690_s19 }
 0x261   : > { %p692_p4 = pnand %p691_p2, %p861_p3  ;;  %p697_p8 = por %p696_p7, %p695_p6 }
 0x263   : > { %p693_p5 = pneg %p692_p4 }
 0x265   : > { %p698_p10 = pnand %p697_p8, %p693_p5 }
 0x267   : > { %701 = shalt.err (!%p698_p10)
}
 0x268   : > { %585 = dma.vmem_to_hbm [thread:$0]  (%p861_p3), %s470_s13, 16, %s472_s16, %s459_s17  }
 0x269 PF: > { %p591_p11 = scmp.ge.s32.totalorder %s768_s30, 2  ;;  %s483_s27 = sand.u32 1, %s740_s23  }
 0x26a   : > { %s484_s9 = scalar_lea.sflag [#allocation6], %s483_s27 }
 0x26b   : > { %p588_p12 = pnand %p591_p11, %p871_p9 }
 0x26d   : > { %p589_p13 = pneg %p588_p12 }
 0x26f   : > { %735 = dma.done.wait (%p589_p13), %s484_s9, 16  }
 0x270   : > { %737 = vsyncadd (%p589_p13), %s484_s9, 4294967280  ;;  %s21_s30 = sadd.s32 1, %s768_s30   ;;  %s982_s10 = sld [smem:[#allocation8_spill]] }
 0x271   : > { %p18_p0 = scmp.ge.s32.totalorder %s21_s30, 8   ;;  %s983_s23 = smov %s744_s24 }
 0x272   : > { %s984_s24 = smov %s748_s25  ;;  %s985_s25 = smov %s879_s14 }
 0x273   : > { %s986_s26 = smov %s760_s28  ;;  %s987_s27 = smov %s764_s29 }
 0x274   : > { %s988_s28 = smov %s991_s8  ;;  %20 = sbr.rel (!%p18_p0) target bundleno = 8 (0x8), region = 90 }
 0x276   : > { %s989_s29 = smov %s982_s10 }
 0x279   :  { %489 = vsyncpa [#allocation6], 1 }
 0x27a   :  { %491 = vsyncpa [#allocation6 + $0x1], 1 }

</bundles_post_ra>
